<compile_context>
chip_gen: v7x
topology: tpu7x:2x2x1
jax: 0.10.0
libtpu: 0.0.40
codegen_flags: <defaults>
</compile_context>

<pallas_src>
import jax
import jax.numpy as jnp
from jax import lax
from jax.experimental import pallas as pl
from jax.experimental.pallas import tpu as pltpu

LN_EPS = 1e-5  # torch.nn.LayerNorm default


def _linear_relu_kernel(x_ref, w_ref, b_ref, o_ref, acc_ref):
    """One (batch-tile, k-tile) grid step.

    x_ref:   (tb, tk)  activation K-slice (f32, cast to bf16 for the MXU)
    w_ref:   (tk, N)   pre-transposed bf16 weight K-slice (a W.T tile)
    b_ref:   (1,  N)   bias (f32)
    o_ref:   (tb, N)   output tile (written on the last K step only)
    acc_ref: (tb, N)   f32 accumulator, resident across the K axis
    """
    k = pl.program_id(1)

    @pl.when(k == 0)
    def _():
        acc_ref[...] = jnp.zeros_like(acc_ref)

    # Linear partial product on the MXU (bf16 operands, f32 accumulation).
    acc_ref[...] += jnp.dot(
        x_ref[...].astype(jnp.bfloat16), w_ref[...],
        preferred_element_type=jnp.float32)

    @pl.when(k == pl.num_programs(1) - 1)
    def _():
        y = acc_ref[...] + b_ref[...]
        # LayerNorm over the last dim, elementwise_affine=False (biased var).
        mean = jnp.mean(y, axis=-1, keepdims=True)
        centered = y - mean
        var = jnp.mean(centered * centered, axis=-1, keepdims=True)
        y = centered * lax.rsqrt(var + LN_EPS)
        # ReLU
        o_ref[...] = jnp.maximum(y, 0.0).astype(o_ref.dtype)


def linear_relu_forward(x, weight, bias, *, block_b=256, block_k=512):
    """x: (B, K) f32; weight: (N, K) in PyTorch Linear convention; bias: (N,)."""
    B, K = x.shape
    N = weight.shape[0]

    # Hoist the transpose + bf16 cast out of the kernel (one-time HBM layout).
    w_t = jnp.asarray(weight).T.astype(jnp.bfloat16)       # (K, N)
    b2 = jnp.asarray(bias, jnp.float32).reshape(1, N)      # (1, N)

    tb = min(block_b, B)
    tk = min(block_k, K)
    assert B % tb == 0 and K % tk == 0, "tile sizes must divide (B, K)"

    grid = (B // tb, K // tk)
    return pl.pallas_call(
        _linear_relu_kernel,
        out_shape=jax.ShapeDtypeStruct((B, N), x.dtype),
        grid_spec=pltpu.PrefetchScalarGridSpec(
            num_scalar_prefetch=0,
            grid=grid,
            in_specs=[
                pl.BlockSpec((tb, tk), lambda i, k: (i, k)),   # x tile
                pl.BlockSpec((tk, N), lambda i, k: (k, 0)),    # W.T tile (streamed)
                pl.BlockSpec((1, N), lambda i, k: (0, 0)),     # bias
            ],
            out_specs=pl.BlockSpec((tb, N), lambda i, k: (i, 0)),
            scratch_shapes=[pltpu.VMEM((tb, N), jnp.float32)],
        ),
        compiler_params=pltpu.CompilerParams(
            # batch axis parallel (v7x dual-TC), reduction axis arbitrary.
            dimension_semantics=("parallel", "arbitrary")),
    )(x, w_t, b2)


def linear_relu_reference(x, weight, bias):
    """Pure-JAX f32 reference of torch: ReLU(LayerNorm(x @ W.T + b))."""
    y = x.astype(jnp.float32) @ weight.T.astype(jnp.float32) + bias[None, :]
    mean = jnp.mean(y, axis=-1, keepdims=True)
    var = jnp.mean(jnp.square(y - mean), axis=-1, keepdims=True)
    y = (y - mean) * lax.rsqrt(var + LN_EPS)
    return jnp.maximum(y, 0.0).astype(x.dtype)


if __name__ == "__main__":
    batch = 8
    input_dim = 64
    output_dim = 32

    key = jax.random.PRNGKey(0)
    kx, kw, kb = jax.random.split(key, 3)

    x = jax.random.normal(kx, (batch, input_dim), dtype=jnp.float32)
    # PyTorch nn.Linear init convention: U(-1/sqrt(in), 1/sqrt(in)), W[out, in].
    bound = 1.0 / (input_dim ** 0.5)
    weight = jax.random.uniform(
        kw, (output_dim, input_dim), dtype=jnp.float32,
        minval=-bound, maxval=bound)
    bias = jax.random.uniform(
        kb, (output_dim,), dtype=jnp.float32, minval=-bound, maxval=bound)

    out = linear_relu_forward(x, weight, bias)
    out = jax.block_until_ready(out)

    ref = linear_relu_reference(x, weight, bias)
    assert out.shape == (batch, output_dim)
    # bf16 MXU operands -> small, bounded deviation from the f32 reference.
    assert jnp.allclose(out, ref, atol=5e-2, rtol=5e-2), "mismatch vs reference"

    print("KERNEL_OK")
</pallas_src>

<mosaic_0001>
module attributes {stable_mosaic.version = 11 : i64} {
  func.func @_linear_relu_kernel(%arg0: i32, %arg1: i32, %arg2: memref<8x64xf32, #tpu.memory_space<vmem>>, %arg3: memref<64x32xbf16, #tpu.memory_space<vmem>>, %arg4: memref<1x32xf32, #tpu.memory_space<vmem>>, %arg5: memref<8x32xf32, #tpu.memory_space<vmem>>, %arg6: memref<8x32xf32, #tpu.memory_space<vmem>>) attributes {dimension_semantics = [#tpu.dimension_semantics<parallel>, #tpu.dimension_semantics<arbitrary>], iteration_bounds = array<i64: 1, 1>, scalar_prefetch = 0 : i64, scratch_operands = 1 : i64, tpu.core_type = #tpu.core_type<tc>, window_params = [{transform_indices = @transform_0, window_bounds = array<i64: 8, 64>}, {transform_indices = @transform_1, window_bounds = array<i64: 64, 32>}, {pipeline_mode = #tpu.pipeline_mode<synchronous>, transform_indices = @transform_2, window_bounds = array<i64: 1, 32>}, {transform_indices = @transform_3, window_bounds = array<i64: 8, 32>}]} {
    %c0_i32 = arith.constant 0 : i32
    %0 = arith.cmpi eq, %arg1, %c0_i32 : i32
    %1 = arith.extui %0 : i1 to i32
    %c0_i32_0 = arith.constant 0 : i32
    %2 = arith.cmpi ne, %1, %c0_i32_0 : i32
    scf.if %2 {
      %cst_10 = arith.constant 0.000000e+00 : f32
      %13 = vector.broadcast %cst_10 : f32 to vector<8x32xf32>
      %c0_11 = arith.constant 0 : index
      %c0_12 = arith.constant 0 : index
      %14 = vector.load %arg6[%c0_11, %c0_12] : memref<8x32xf32, #tpu.memory_space<vmem>>, vector<8x32xf32>
      tpu.vector_store %arg6[%c0_11, %c0_12], %13 {strides = array<i32>} : memref<8x32xf32, #tpu.memory_space<vmem>>, vector<8x32xf32>,
    } else {
    }
    %c0 = arith.constant 0 : index
    %c0_1 = arith.constant 0 : index
    %3 = vector.load %arg6[%c0, %c0_1] : memref<8x32xf32, #tpu.memory_space<vmem>>, vector<8x32xf32>
    %c0_2 = arith.constant 0 : index
    %c0_3 = arith.constant 0 : index
    %4 = vector.load %arg2[%c0_2, %c0_3] : memref<8x64xf32, #tpu.memory_space<vmem>>, vector<8x64xf32>
    %5 = arith.truncf %4 : vector<8x64xf32> to vector<8x64xbf16>
    %c0_4 = arith.constant 0 : index
    %c0_5 = arith.constant 0 : index
    %6 = vector.load %arg3[%c0_4, %c0_5] : memref<64x32xbf16, #tpu.memory_space<vmem>>, vector<64x32xbf16>
    %cst = arith.constant dense<0.000000e+00> : vector<8x32xf32>
    %7 = tpu.matmul %5, %6, %cst {dimension_numbers = #tpu.dot_dimension_numbers<[1], [0], [0], [1], [0, 0, 1, 1], [], []>} : vector<8x64xbf16>, vector<64x32xbf16>, vector<8x32xf32> -> vector<8x32xf32>
    %8 = arith.addf %3, %7 : vector<8x32xf32>
    %c0_6 = arith.constant 0 : index
    %c0_7 = arith.constant 0 : index
    %9 = vector.load %arg6[%c0_6, %c0_7] : memref<8x32xf32, #tpu.memory_space<vmem>>, vector<8x32xf32>
    tpu.vector_store %arg6[%c0_6, %c0_7], %8 {strides = array<i32>} : memref<8x32xf32, #tpu.memory_space<vmem>>, vector<8x32xf32>,
    %c0_i32_8 = arith.constant 0 : i32
    %10 = arith.cmpi eq, %arg1, %c0_i32_8 : i32
    %11 = arith.extui %10 : i1 to i32
    %c0_i32_9 = arith.constant 0 : i32
    %12 = arith.cmpi ne, %11, %c0_i32_9 : i32
    scf.if %12 {
      %c0_10 = arith.constant 0 : index
      %c0_11 = arith.constant 0 : index
      %13 = vector.load %arg6[%c0_10, %c0_11] : memref<8x32xf32, #tpu.memory_space<vmem>>, vector<8x32xf32>
      %c0_12 = arith.constant 0 : index
      %c0_13 = arith.constant 0 : index
      %14 = vector.load %arg4[%c0_12, %c0_13] : memref<1x32xf32, #tpu.memory_space<vmem>>, vector<1x32xf32>
      %15 = vector.broadcast %14 : vector<1x32xf32> to vector<8x32xf32>
      %16 = arith.addf %13, %15 : vector<8x32xf32>
      %cst_14 = arith.constant dense<0.000000e+00> : vector<8xf32>
      %17 = vector.multi_reduction <add>, %16, %cst_14 [1] : vector<8x32xf32> to vector<8xf32>
      %18 = vector.shape_cast %17 : vector<8xf32> to vector<8x1xf32>
      %cst_15 = arith.constant 3.200000e+01 : f32
      %19 = vector.broadcast %cst_15 : f32 to vector<8x1xf32>
      %20 = arith.divf %18, %19 : vector<8x1xf32>
      %21 = vector.broadcast %20 : vector<8x1xf32> to vector<8x32xf32>
      %22 = arith.subf %16, %21 : vector<8x32xf32>
      %23 = arith.mulf %22, %22 : vector<8x32xf32>
      %cst_16 = arith.constant dense<0.000000e+00> : vector<8xf32>
      %24 = vector.multi_reduction <add>, %23, %cst_16 [1] : vector<8x32xf32> to vector<8xf32>
      %25 = vector.shape_cast %24 : vector<8xf32> to vector<8x1xf32>
      %cst_17 = arith.constant 3.200000e+01 : f32
      %26 = vector.broadcast %cst_17 : f32 to vector<8x1xf32>
      %27 = arith.divf %25, %26 : vector<8x1xf32>
      %cst_18 = arith.constant 9.99999974E-6 : f32
      %28 = vector.broadcast %cst_18 : f32 to vector<8x1xf32>
      %29 = arith.addf %27, %28 : vector<8x1xf32>
      %30 = math.rsqrt %29 : vector<8x1xf32>
      %31 = vector.broadcast %30 : vector<8x1xf32> to vector<8x32xf32>
      %32 = arith.mulf %22, %31 : vector<8x32xf32>
      %cst_19 = arith.constant 0.000000e+00 : f32
      %33 = vector.broadcast %cst_19 : f32 to vector<8x32xf32>
      %34 = arith.maximumf %32, %33 : vector<8x32xf32>
      %c0_20 = arith.constant 0 : index
      %c0_21 = arith.constant 0 : index
      %35 = vector.load %arg5[%c0_20, %c0_21] : memref<8x32xf32, #tpu.memory_space<vmem>>, vector<8x32xf32>
      tpu.vector_store %arg5[%c0_20, %c0_21], %34 {strides = array<i32>} : memref<8x32xf32, #tpu.memory_space<vmem>>, vector<8x32xf32>,
    } else {
    }
    return
  }
  func.func @transform_0(%arg0: i32, %arg1: i32) -> (i32, i32) {
    %c0_i32 = arith.constant 0 : i32
    return %arg0, %arg1 : i32, i32
  }
  func.func @transform_1(%arg0: i32, %arg1: i32) -> (i32, i32) {
    %c0_i32 = arith.constant 0 : i32
    %c0_i32_0 = arith.constant 0 : i32
    return %arg1, %c0_i32 : i32, i32
  }
  func.func @transform_2(%arg0: i32, %arg1: i32) -> (i32, i32) {
    %c0_i32 = arith.constant 0 : i32
    %c0_i32_0 = arith.constant 0 : i32
    %c0_i32_1 = arith.constant 0 : i32
    return %c0_i32, %c0_i32_0 : i32, i32
  }
  func.func @transform_3(%arg0: i32, %arg1: i32) -> (i32, i32) {
    %c0_i32 = arith.constant 0 : i32
    %c0_i32_0 = arith.constant 0 : i32
    return %arg0, %c0_i32 : i32, i32
  }
}

</mosaic_0001>

<bundles_post_ra>
// kernel: tpu_custom_call.1
= control target key start
LH: loop header
LB: loop body
LE: loop exit
PB: predicated region body
PF: predicated region fallthrough
CT: control target
= control target key end

     0   :  { %v202_v1 = vmov 0.0   ;;  %vm203_vm0 = vmmov 0   ;;  %vm20_vm1 = vcmask 261120   ;;  %s260_s0 = inlined_call_operand.vmem [shape: f32[8,64], index: 0, kind: input, shape index: {}]   ;;  %s261_s1 = inlined_call_operand.vmem [shape: bf16[64,32], index: 1, kind: input, shape index: {}]   ;;  %s262_s2 = inlined_call_operand.vmem [shape: f32[1,32], index: 2, kind: input, shape index: {}]   ;;  %s263_s3 = inlined_call_operand.hbm [shape: f32[8,32], index: 3, kind: output, shape index: {}]  }
   0x1   :  { %v172_v0 = vld [vmem:[%s261_s1] sm:$0xff]   ;;  %157 = vmatprep.subr.bf16.mxu0 %v202_v1  ;;  %v173_v2 = vld [vmem:[%s261_s1 + $0x8] sm:$0xff]   ;;  %165 = vmatprep.mubr.msk.bf16.mxu0 %vm203_vm0, %v202_v1  ;;  %21 = vst.msk [vmem:[#allocation2] sm:$0xff] %vm20_vm1, %v202_v1 }
   0x2   :  { %158 = vmatpush3.bf16.msra.mxu0 %v172_v0 }
   0x3   :  { %159 = vmatprep.subr.bf16.mxu0 %v202_v1 }
   0x4   :  { %8 = vsyncpa [#allocation4], 0  ;;  %v174_v3 = vld [vmem:[%s261_s1 + $0x10] sm:$0xff]   ;;  %v175_v4 = vld [vmem:[%s261_s1 + $0x18] sm:$0xff]   ;;  %vm57_vm2 = vcmask 523264  }
   0x5   :  { %v23_v5 = vld [vmem:[%s260_s0] sm:$0xff]  ;;  %s204_s0 = smov [#allocation3]  }
   0x6   :  { %160 = vmatpush3.bf16.msra.mxu0 %v173_v2  ;;  %v24_v6 = vpack.c.bf16 %v23_v5, %v23_v5  ;;  %v151_v13 = vld [vmem:[%s262_s2] ss:$0 sm:$0xff]  ;;  %s138_s1 = sshll.u32 %s204_s0, 4  ;;  %s139_s1 = int_to_ptr.vmem [resolvable:$true] %s138_s1 }
   0x7   :  { %161 = vmatprep.subr.bf16.mxu0 %v202_v1  ;;  %s178_s2 = scalar_lea.vmem %s139_s1, 128  ;;  %p183_p1 = scmp.lt.s32.totalorder %s139_s1, %s139_s1 }
   0x8   :  { %v22_v7 = vld [vmem:[#allocation2] sm:$0xff]  ;;  %p179_p0 = scmp.ne.s32.totalorder %s139_s1, %s178_s2  ;;  %p184_p2 = scmp.lt.s32.totalorder %s178_s2, %s178_s2 }
   0xa   :  { %162 = vmatpush3.bf16.msra.mxu0 %v174_v3  ;;  %p185_p3 = por %p184_p2, %p183_p1 }
   0xb   :  { %163 = vmatprep.subr.bf16.mxu0 %v202_v1 }
   0xc   :  { %p186_p4 = pnand %p185_p3, %p179_p0 }
   0xe   :  { %164 = vmatpush3.bf16.msra.mxu0 %v175_v4 }
  0x11   :  { %166 = vmatmul.mubr.msk.bf16.vlgmr.msra.gmra.mrb[0].mxu0 %vm57_vm2, %v24_v6 }
  0xe4   :  { %v95_v8 = vpop.f32.mrb[0].mxu0 }
  0xe5   :  { %v101_v9 = vadd.f32 %v95_v8, %v22_v7  ;;  %v167_v10 = vpop.f32.mrb[1].mxu0 }
  0xe6   :  { %v98_v11 = vpop.f32.mrb[2].mxu0 }
  0xe7   :  { %103 = vst.msk [vmem:[#allocation2] sm:$0xff] %vm20_vm1, %v101_v9  ;;  %v168_v12 = vpop.f32.mrb[3].mxu0 }
  0xee   :  { %v107_v14 = vld [vmem:[#allocation2] sm:$0xff] }
  0xef   :  { %v115_v15 = vadd.f32 %v151_v13, %v107_v14 }
  0xf1   :  { %v116_v16 = vsel %vm20_vm1, %v115_v15, 0.0 }
  0xf2   :  { %117 = vadd.xlane.f32.xlu0 %v116_v16 }
 0x17f   :  { %v118_v17 = vpop.xlane.xlu0 %117 }
 0x180   :  { %v120_v18 = vmul.f32 0.03125, %v118_v17 }
 0x182   :  { %v121_v19 = vsub.f32 %v115_v15, %v120_v18 }
 0x184   :  { %v122_v20 = vmul.f32 %v121_v19, %v121_v19 }
 0x186   :  { %v123_v21 = vsel %vm20_vm1, %v122_v20, 0.0 }
 0x187   :  { %124 = vadd.xlane.f32.xlu0 %v123_v21 }
 0x214   :  { %v125_v22 = vpop.xlane.xlu0 %124 }
 0x215   :  { %v126_v23 = vmul.f32 0.03125, %v125_v22 }
 0x217   :  { %v127_v24 = vadd.f32 1e-05, %v126_v23 }
 0x219   :  { %176 = vrsqrt.f32 %v127_v24 }
 0x223   :  { %v177_v25 = vpop.eup %176 }
 0x224   :  { %v129_v26 = vmul.f32 %v177_v25, %v121_v19 }
 0x226   :  { %v130_v27 = vmax.f32 %v129_v26, 0.0 }
 0x228   :  { %131 = vst.msk [vmem:[#allocation3] sm:$0xff] %vm20_vm1, %v130_v27 }
 0x229   :  { %189 = shalt.err (!%p186_p4)
}
 0x22a   :  { %s190_s26 = scalar_lea.hbm %s263_s3, 128 }
 0x22b   :  { %p191_p5 = scmp.ne.s32.totalorder %s263_s3, %s190_s26  ;;  %p194_p6 = scmp.lt.u32.totalorder %s190_s26, %s263_s3 }
 0x22d   :  { %p196_p7 = pnand %p194_p6, %p191_p5 }
 0x22f   :  { %199 = shalt.err (!%p196_p7)
}
 0x230   :  { %141 = dma.vmem_to_hbm [thread:$0]  %s139_s1, 128, %s263_s3, [#allocation4]  }
 0x231   :  { %200 = dma.done.wait [#allocation4], 128  }
 0x232   :  { %201 = vsyncadd [#allocation4], 4294967168 }
 0x233   :  { %145 = vsyncpa [#allocation4], 1 }

</bundles_post_ra>
